<compile_context>
chip_gen: v7x
topology: tpu7x:2x2x1
jax: 0.10.0
libtpu: 0.0.40
codegen_flags: <defaults>
</compile_context>

<pallas_src>
import functools
import math

import jax
import jax.numpy as jnp
from jax.experimental import pallas as pl
from jax.experimental.pallas import tpu as pltpu


# ---------------------------------------------------------------------------
# Tunables (bytes)
# ---------------------------------------------------------------------------
_DEFAULT_BLOCK_BUDGET = 2 * 1024 * 1024   # target per-block size (~0.5-4 MiB sweet spot)
_VMEM_SOFT_LIMIT = 12 * 1024 * 1024       # below this, default scoped VMEM is enough (v5e = 16 MiB)
_VMEM_HARD_CAP = 40 * 1024 * 1024         # stay well under v7x's 64 MiB physical VMEM
_MIN_PALLAS_BYTES = 1 * 1024 * 1024       # below this a standalone pallas_call isn't worth it


def _collapse_runs(shape, order):
    """Merge runs of input axes that stay adjacent and in-order in the output.

    Returns (new_shape, new_order) such that
        transpose(x.reshape(new_shape), new_order).reshape(out_shape)
    equals transpose(x, order).  Both reshapes are contiguous (free).
    """
    groups = []  # in output order; each entry = list of consecutive input axes
    for j, a in enumerate(order):
        if j > 0 and a == order[j - 1] + 1:
            groups[-1].append(a)
        else:
            groups.append([a])
    by_input = sorted(range(len(groups)), key=lambda g: groups[g][0])
    new_axis_of_group = {g: i for i, g in enumerate(by_input)}
    new_shape = tuple(
        int(math.prod(shape[a] for a in groups[g])) for g in by_input)
    new_order = tuple(new_axis_of_group[g] for g in range(len(groups)))
    return new_shape, new_order


def _largest_divisor_leq(n, m):
    m = int(min(n, max(1, m)))
    for d in range(m, 0, -1):
        if n % d == 0:
            return d
    return 1


def _transpose_kernel(order, x_ref, o_ref):
    # Block-local permutation on a VMEM-resident tile (XLU transpose /
    # sublane relayout).  Block shapes are full-extent on the lane/sublane
    # dims of both input and output, so loads and stores are unmasked
    # whenever the array dims themselves are tile-aligned.
    o_ref[...] = jnp.transpose(x_ref[...], order)


def permute_tensor(x: jax.Array, permute_order, *, force_pallas: bool = False,
                   block_budget_bytes: int = _DEFAULT_BLOCK_BUDGET) -> jax.Array:
    """Pallas equivalent of torch.Tensor.permute(*permute_order)."""
    order = tuple(int(p) for p in permute_order)
    ndim = x.ndim
    if sorted(order) != list(range(ndim)):
        raise ValueError(f"invalid permutation {order} for rank-{ndim} input")
    out_shape = tuple(x.shape[a] for a in order)

    # Identity permutation: pure no-op.
    if order == tuple(range(ndim)):
        return x

    itemsize = jnp.dtype(x.dtype).itemsize
    total_bytes = int(math.prod(x.shape)) * itemsize

    # Tiny tensors: let XLA absorb the permute as a layout change instead of
    # paying a kernel launch plus a materialized HBM round trip.
    if not force_pallas and total_bytes < _MIN_PALLAS_BYTES:
        return jnp.transpose(x, order)

    # Normalize: collapse contiguous runs (free reshapes outside the kernel).
    n_shape, n_order = _collapse_runs(x.shape, order)
    n = len(n_shape)
    assert n >= 2, "non-identity permutation must have rank >= 2 after collapse"
    n_out_shape = tuple(n_shape[a] for a in n_order)
    xin = x.reshape(n_shape)

    # Axes kept at full extent inside every block: last two of the input AND
    # last two of the output (so both BlockSpecs satisfy the
    # (8,128)-or-full-extent rule regardless of the actual dim sizes).
    keep = {n - 1, n - 2, n_order[-1], n_order[-2]}
    tiled_axes = [a for a in range(n) if a not in keep]

    block = [1] * n
    for a in keep:
        block[a] = n_shape[a]
    cur_bytes = int(math.prod(block)) * itemsize

    if tiled_axes:
        outpos = {a: n_order.index(a) for a in tiled_axes}
        # Grow blocks along the tiled axes (innermost-in-output first) up to
        # the per-block byte budget; divisor-sized blocks tile the grid exactly
        # (no partial blocks).
        for a in sorted(tiled_axes, key=lambda ax: -outpos[ax]):
            if cur_bytes >= block_budget_bytes:
                break
            mult = block_budget_bytes // cur_bytes
            block[a] = _largest_divisor_leq(n_shape[a], mult)
            cur_bytes *= block[a]

        # One grid axis per tiled input axis; fastest-varying grid axis is the
        # innermost remaining output axis (successive steps write adjacent
        # output slabs).  Every block is independent -> all parallel, so the
        # two TensorCores on v7x can both stream DMA.
        grid_axes = sorted(tiled_axes, key=lambda ax: outpos[ax])
        grid = tuple(n_shape[a] // block[a] for a in grid_axes)
        gpos = {a: i for i, a in enumerate(grid_axes)}

        def in_map(*g, _gpos=gpos, _n=n):
            return tuple(g[_gpos[a]] if a in _gpos else 0 for a in range(_n))

        def out_map(*g, _gpos=gpos, _order=n_order, _n=n):
            return tuple(
                g[_gpos[_order[j]]] if _order[j] in _gpos else 0
                for j in range(_n))

        dim_sem = ("parallel",) * len(grid)
    else:
        # Whole (normalized) array is a single block (e.g. a rank-2 full
        # transpose after collapsing).  Only allowed if it fits VMEM below.
        grid = (1,)
        in_map = lambda i, _n=n: (0,) * _n
        out_map = lambda i, _n=n: (0,) * _n
        dim_sem = ("arbitrary",)

    in_block = tuple(block)
    out_block = tuple(block[n_order[j]] for j in range(n))
    block_bytes = int(math.prod(in_block)) * itemsize
    # Double-buffered input + output blocks plus slack.
    vmem_need = 4 * block_bytes + (1 << 20)

    if vmem_need > _VMEM_HARD_CAP:
        # TODO(synk): sub-tile the full-extent lane/sublane dims for huge
        # minor-dim-moving permutes instead of falling back to XLA transpose.
        return jnp.transpose(x, order)

    cp_kwargs = dict(dimension_semantics=dim_sem)
    if vmem_need > _VMEM_SOFT_LIMIT:
        cp_kwargs["vmem_limit_bytes"] = int(vmem_need)

    out_n = pl.pallas_call(
        functools.partial(_transpose_kernel, n_order),
        out_shape=jax.ShapeDtypeStruct(n_out_shape, x.dtype),
        grid=grid,
        in_specs=[pl.BlockSpec(in_block, in_map)],
        out_specs=pl.BlockSpec(out_block, out_map),
        compiler_params=pltpu.CompilerParams(**cp_kwargs),
    )(xin)
    return out_n.reshape(out_shape)


class PermuteTensor:
    """JAX/Pallas mirror of the PyTorch nn.Module: holds a static permute order."""

    def __init__(self, permute_order, *, force_pallas: bool = False,
                 block_budget_bytes: int = _DEFAULT_BLOCK_BUDGET):
        if isinstance(permute_order, (list, tuple)):
            order = tuple(int(p) for p in permute_order)
        elif hasattr(permute_order, "tolist"):  # numpy / jax array (torch.Tensor analogue)
            order = tuple(int(p) for p in permute_order.tolist())
        else:
            raise TypeError(
                "Input should be a list, tuple or array, got {} instead.".format(
                    type(permute_order)))
        self._permute_order = order
        self._force_pallas = force_pallas
        self._block_budget_bytes = block_budget_bytes

    def __call__(self, x: jax.Array) -> jax.Array:
        return permute_tensor(x, self._permute_order,
                              force_pallas=self._force_pallas,
                              block_budget_bytes=self._block_budget_bytes)


if __name__ == "__main__":
    cases = [
        ((2, 4, 16, 16), (0, 2, 3, 1)),   # NCHW -> NHWC (collapses H,W run)
        ((2, 4, 16, 16), (1, 0, 3, 2)),   # swap N/C and H/W (no collapse)
        ((2, 4, 16, 16), (2, 3, 0, 1)),   # collapses to a rank-2 full transpose
        ((2, 4, 16, 16), (0, 1, 2, 3)),   # identity -> no-op fast path
        ((4, 8, 32, 32), (0, 2, 3, 1)),   # multi-step grid (small block budget)
        ((4, 8, 32, 32), (1, 0, 3, 2)),   # 2-D grid (small block budget)
    ]

    for shape, order in cases:
        x = jax.random.normal(jax.random.PRNGKey(0), shape, dtype=jnp.float32)
        # force_pallas=True + small block budget so the Pallas kernel and the
        # multi-axis grid path are actually exercised at these small shapes.
        module = PermuteTensor(order, force_pallas=True,
                               block_budget_bytes=64 * 1024)
        out = jax.block_until_ready(module(x))
        ref = jnp.transpose(x, order)
        assert out.shape == ref.shape, (order, out.shape, ref.shape)
        assert out.dtype == ref.dtype, (order, out.dtype, ref.dtype)
        assert jnp.array_equal(out, ref), f"mismatch for order={order} shape={shape}"

    print("KERNEL_OK")
</pallas_src>

<mosaic_0001>
module attributes {stable_mosaic.version = 11 : i64} {
  func.func @_transpose_kernel(%arg0: i32, %arg1: memref<2x4x256xf32, #tpu.memory_space<vmem>>, %arg2: memref<2x256x4xf32, #tpu.memory_space<vmem>>) attributes {dimension_semantics = [#tpu.dimension_semantics<parallel>], iteration_bounds = array<i64: 1>, scalar_prefetch = 0 : i64, scratch_operands = 0 : i64, tpu.core_type = #tpu.core_type<tc>, window_params = [{transform_indices = @transform_0, window_bounds = array<i64: 2, 4, 256>}, {transform_indices = @transform_1, window_bounds = array<i64: 2, 256, 4>}]} {
    %c0 = arith.constant 0 : index
    %c0_0 = arith.constant 0 : index
    %c0_1 = arith.constant 0 : index
    %0 = vector.load %arg1[%c0, %c0_0, %c0_1] : memref<2x4x256xf32, #tpu.memory_space<vmem>>, vector<2x4x256xf32>
    %1 = tpu.transpose %0, [0, 2, 1] : vector<2x4x256xf32> -> vector<2x256x4xf32>
    %c0_2 = arith.constant 0 : index
    %c0_3 = arith.constant 0 : index
    %c0_4 = arith.constant 0 : index
    %2 = vector.load %arg2[%c0_2, %c0_3, %c0_4] : memref<2x256x4xf32, #tpu.memory_space<vmem>>, vector<2x256x4xf32>
    tpu.vector_store %arg2[%c0_2, %c0_3, %c0_4], %1 {strides = array<i32>} : memref<2x256x4xf32, #tpu.memory_space<vmem>>, vector<2x256x4xf32>,
    return
  }
  func.func @transform_0(%arg0: i32) -> (i32, i32, i32) {
    %c0_i32 = arith.constant 0 : i32
    %c0_i32_0 = arith.constant 0 : i32
    %c0_i32_1 = arith.constant 0 : i32
    return %arg0, %c0_i32, %c0_i32_0 : i32, i32, i32
  }
  func.func @transform_1(%arg0: i32) -> (i32, i32, i32) {
    %c0_i32 = arith.constant 0 : i32
    %c0_i32_0 = arith.constant 0 : i32
    %c0_i32_1 = arith.constant 0 : i32
    return %arg0, %c0_i32, %c0_i32_0 : i32, i32, i32
  }
}

</mosaic_0001>

<bundles_post_ra>
// kernel: tpu_custom_call.1
= control target key start
LH: loop header
LB: loop body
LE: loop exit
PB: predicated region body
PF: predicated region fallthrough
CT: control target
= control target key end

     0   :  { %6 = vsyncpa [#allocation3], 0  ;;  %s258_s6 = smov [#allocation2]   ;;  %s539_s0 = inlined_call_operand.hbm [shape: f32[2,4,256], index: 0, kind: input, shape index: {}]   ;;  %s540_s1 = inlined_call_operand.vmem [shape: f32[2,256,4], index: 1, kind: output, shape index: {}]  }
   0x1   :  { %s12_s7 = sshll.u32 %s258_s6, 4  ;;  %s234_s10 = scalar_lea.hbm %s539_s0, 256  ;;  %s13_s7 = int_to_ptr.vmem [resolvable:$true] %s12_s7 }
   0x2   :  { %p235_p0 = scmp.ne.s32.totalorder %s539_s0, %s234_s10  ;;  %p238_p1 = scmp.lt.u32.totalorder %s234_s10, %s539_s0 }
   0x4   :  { %p240_p2 = pnand %p238_p1, %p235_p0 }
   0x6   :  { %243 = shalt.err (!%p240_p2)
}
   0x7   :  { %s244_s15 = scalar_lea.vmem %s13_s7, 256  ;;  %p249_p4 = scmp.lt.s32.totalorder %s13_s7, %s13_s7 }
   0x8   :  { %p245_p3 = scmp.ne.s32.totalorder %s13_s7, %s244_s15  ;;  %p250_p5 = scmp.lt.s32.totalorder %s244_s15, %s244_s15 }
   0xa   :  { %p251_p6 = por %p250_p5, %p249_p4 }
   0xc   :  { %p252_p7 = pnand %p251_p6, %p245_p3 }
   0xe   :  { %255 = shalt.err (!%p252_p7)
}
   0xf   :  { %s259_s16 = smov 128   ;;  %s260_s17 = smov 8  }
  0x10   :  { %18 = dma.hbm_to_vmem [thread:$0]  %s539_s0, 256, %s13_s7, [#allocation3], %s259_s16, %s259_s16, %s260_s17  }
  0x11   :  { %256 = dma.done.wait [#allocation3], 256  }
  0x12   :  { %257 = vsyncadd [#allocation3], 4294967040  ;;  %v23_v0 = vld [vmem:[#allocation2 + $0x8] sm:$0xff]  ;;  %v22_v1 = vld [vmem:[#allocation2] sm:$0xff]  ;;  %vm158_vm0 = vcmask 31744  }
  0x13   :  { %94 = vxpose.xlu1.b32.start.end [1/1] (short) %v23_v0, 128  ;;  %30 = vxpose.xlu0.b32.start.end [1/1] (short) %v22_v1, 128  ;;  %v27_v2 = vcombine.high %v23_v0, %v23_v0  ;;  %v26_v3 = vcombine.high %v22_v1, %v22_v1 }
  0x50   :  { %126 = vxpose.xlu1.b32.start.end [1/1] (short) %v27_v2, 128  ;;  %62 = vxpose.xlu0.b32.start.end [1/1] (short) %v26_v3, 128 }
  0x93   :  { %v110_v4 = vpop.trf.xlu1  ;;  %v46_v5 = vpop.trf.xlu0 }
  0x94   :  { %191 = vst.msk [vmem:[%s540_s1 + $0x100] sm:$0xff] %vm158_vm0, %v110_v4  ;;  %159 = vst.msk [vmem:[%s540_s1] sm:$0xff] %vm158_vm0, %v46_v5 }
  0x97   :  { %v111_v6 = vpop.trf.xlu1  ;;  %v47_v7 = vpop.trf.xlu0 }
  0x98   :  { %192 = vst.msk [vmem:[%s540_s1 + $0x108] sm:$0xff] %vm158_vm0, %v111_v6  ;;  %160 = vst.msk [vmem:[%s540_s1 + $0x8] sm:$0xff] %vm158_vm0, %v47_v7 }
  0x9b   :  { %v112_v8 = vpop.trf.xlu1  ;;  %v48_v9 = vpop.trf.xlu0 }
  0x9c   :  { %193 = vst.msk [vmem:[%s540_s1 + $0x110] sm:$0xff] %vm158_vm0, %v112_v8  ;;  %161 = vst.msk [vmem:[%s540_s1 + $0x10] sm:$0xff] %vm158_vm0, %v48_v9 }
  0x9f   :  { %v113_v10 = vpop.trf.xlu1  ;;  %v49_v11 = vpop.trf.xlu0 }
  0xa0   :  { %194 = vst.msk [vmem:[%s540_s1 + $0x118] sm:$0xff] %vm158_vm0, %v113_v10  ;;  %162 = vst.msk [vmem:[%s540_s1 + $0x18] sm:$0xff] %vm158_vm0, %v49_v11 }
  0xa3   :  { %v114_v12 = vpop.trf.xlu1  ;;  %v50_v13 = vpop.trf.xlu0 }
  0xa4   :  { %195 = vst.msk [vmem:[%s540_s1 + $0x120] sm:$0xff] %vm158_vm0, %v114_v12  ;;  %163 = vst.msk [vmem:[%s540_s1 + $0x20] sm:$0xff] %vm158_vm0, %v50_v13 }
  0xa7   :  { %v115_v14 = vpop.trf.xlu1  ;;  %v51_v15 = vpop.trf.xlu0 }
  0xa8   :  { %196 = vst.msk [vmem:[%s540_s1 + $0x128] sm:$0xff] %vm158_vm0, %v115_v14  ;;  %164 = vst.msk [vmem:[%s540_s1 + $0x28] sm:$0xff] %vm158_vm0, %v51_v15 }
  0xab   :  { %v116_v16 = vpop.trf.xlu1  ;;  %v52_v17 = vpop.trf.xlu0 }
  0xac   :  { %197 = vst.msk [vmem:[%s540_s1 + $0x130] sm:$0xff] %vm158_vm0, %v116_v16  ;;  %165 = vst.msk [vmem:[%s540_s1 + $0x30] sm:$0xff] %vm158_vm0, %v52_v17 }
  0xaf   :  { %v117_v18 = vpop.trf.xlu1  ;;  %v53_v19 = vpop.trf.xlu0 }
  0xb0   :  { %198 = vst.msk [vmem:[%s540_s1 + $0x138] sm:$0xff] %vm158_vm0, %v117_v18  ;;  %166 = vst.msk [vmem:[%s540_s1 + $0x38] sm:$0xff] %vm158_vm0, %v53_v19 }
  0xb3   :  { %v118_v20 = vpop.trf.xlu1  ;;  %v54_v21 = vpop.trf.xlu0 }
  0xb4   :  { %199 = vst.msk [vmem:[%s540_s1 + $0x140] sm:$0xff] %vm158_vm0, %v118_v20  ;;  %167 = vst.msk [vmem:[%s540_s1 + $0x40] sm:$0xff] %vm158_vm0, %v54_v21 }
  0xb7   :  { %v119_v22 = vpop.trf.xlu1  ;;  %v55_v23 = vpop.trf.xlu0 }
  0xb8   :  { %200 = vst.msk [vmem:[%s540_s1 + $0x148] sm:$0xff] %vm158_vm0, %v119_v22  ;;  %168 = vst.msk [vmem:[%s540_s1 + $0x48] sm:$0xff] %vm158_vm0, %v55_v23 }
  0xbb   :  { %v120_v24 = vpop.trf.xlu1  ;;  %v56_v25 = vpop.trf.xlu0 }
  0xbc   :  { %201 = vst.msk [vmem:[%s540_s1 + $0x150] sm:$0xff] %vm158_vm0, %v120_v24  ;;  %169 = vst.msk [vmem:[%s540_s1 + $0x50] sm:$0xff] %vm158_vm0, %v56_v25 }
  0xbf   :  { %v121_v26 = vpop.trf.xlu1  ;;  %v57_v27 = vpop.trf.xlu0 }
  0xc0   :  { %202 = vst.msk [vmem:[%s540_s1 + $0x158] sm:$0xff] %vm158_vm0, %v121_v26  ;;  %170 = vst.msk [vmem:[%s540_s1 + $0x58] sm:$0xff] %vm158_vm0, %v57_v27 }
  0xc3   :  { %v122_v28 = vpop.trf.xlu1  ;;  %v58_v29 = vpop.trf.xlu0 }
  0xc4   :  { %203 = vst.msk [vmem:[%s540_s1 + $0x160] sm:$0xff] %vm158_vm0, %v122_v28  ;;  %171 = vst.msk [vmem:[%s540_s1 + $0x60] sm:$0xff] %vm158_vm0, %v58_v29 }
  0xc7   :  { %v123_v30 = vpop.trf.xlu1  ;;  %v59_v31 = vpop.trf.xlu0 }
  0xc8   :  { %204 = vst.msk [vmem:[%s540_s1 + $0x168] sm:$0xff] %vm158_vm0, %v123_v30  ;;  %172 = vst.msk [vmem:[%s540_s1 + $0x68] sm:$0xff] %vm158_vm0, %v59_v31 }
  0xcb   :  { %v124_v32 = vpop.trf.xlu1  ;;  %v60_v33 = vpop.trf.xlu0 }
  0xcc   :  { %205 = vst.msk [vmem:[%s540_s1 + $0x170] sm:$0xff] %vm158_vm0, %v124_v32  ;;  %173 = vst.msk [vmem:[%s540_s1 + $0x70] sm:$0xff] %vm158_vm0, %v60_v33 }
  0xcf   :  { %v125_v34 = vpop.trf.xlu1  ;;  %v61_v35 = vpop.trf.xlu0 }
  0xd0   :  { %206 = vst.msk [vmem:[%s540_s1 + $0x178] sm:$0xff] %vm158_vm0, %v125_v34  ;;  %174 = vst.msk [vmem:[%s540_s1 + $0x78] sm:$0xff] %vm158_vm0, %v61_v35 }
  0xd3   :  { %v142_v36 = vpop.trf.xlu1  ;;  %v78_v37 = vpop.trf.xlu0 }
  0xd4   :  { %207 = vst.msk [vmem:[%s540_s1 + $0x180] sm:$0xff] %vm158_vm0, %v142_v36  ;;  %175 = vst.msk [vmem:[%s540_s1 + $0x80] sm:$0xff] %vm158_vm0, %v78_v37 }
  0xd7   :  { %v143_v38 = vpop.trf.xlu1  ;;  %v79_v39 = vpop.trf.xlu0 }
  0xd8   :  { %208 = vst.msk [vmem:[%s540_s1 + $0x188] sm:$0xff] %vm158_vm0, %v143_v38  ;;  %176 = vst.msk [vmem:[%s540_s1 + $0x88] sm:$0xff] %vm158_vm0, %v79_v39 }
  0xdb   :  { %v144_v40 = vpop.trf.xlu1  ;;  %v80_v41 = vpop.trf.xlu0 }
  0xdc   :  { %209 = vst.msk [vmem:[%s540_s1 + $0x190] sm:$0xff] %vm158_vm0, %v144_v40  ;;  %177 = vst.msk [vmem:[%s540_s1 + $0x90] sm:$0xff] %vm158_vm0, %v80_v41 }
  0xdf   :  { %v145_v42 = vpop.trf.xlu1  ;;  %v81_v43 = vpop.trf.xlu0 }
  0xe0   :  { %210 = vst.msk [vmem:[%s540_s1 + $0x198] sm:$0xff] %vm158_vm0, %v145_v42  ;;  %178 = vst.msk [vmem:[%s540_s1 + $0x98] sm:$0xff] %vm158_vm0, %v81_v43 }
  0xe3   :  { %v146_v44 = vpop.trf.xlu1  ;;  %v82_v45 = vpop.trf.xlu0 }
  0xe4   :  { %211 = vst.msk [vmem:[%s540_s1 + $0x1a0] sm:$0xff] %vm158_vm0, %v146_v44  ;;  %179 = vst.msk [vmem:[%s540_s1 + $0xa0] sm:$0xff] %vm158_vm0, %v82_v45 }
  0xe7   :  { %v147_v46 = vpop.trf.xlu1  ;;  %v83_v47 = vpop.trf.xlu0 }
  0xe8   :  { %212 = vst.msk [vmem:[%s540_s1 + $0x1a8] sm:$0xff] %vm158_vm0, %v147_v46  ;;  %180 = vst.msk [vmem:[%s540_s1 + $0xa8] sm:$0xff] %vm158_vm0, %v83_v47 }
  0xeb   :  { %v148_v48 = vpop.trf.xlu1  ;;  %v84_v49 = vpop.trf.xlu0 }
  0xec   :  { %213 = vst.msk [vmem:[%s540_s1 + $0x1b0] sm:$0xff] %vm158_vm0, %v148_v48  ;;  %181 = vst.msk [vmem:[%s540_s1 + $0xb0] sm:$0xff] %vm158_vm0, %v84_v49 }
  0xef   :  { %v149_v50 = vpop.trf.xlu1  ;;  %v85_v51 = vpop.trf.xlu0 }
  0xf0   :  { %214 = vst.msk [vmem:[%s540_s1 + $0x1b8] sm:$0xff] %vm158_vm0, %v149_v50  ;;  %182 = vst.msk [vmem:[%s540_s1 + $0xb8] sm:$0xff] %vm158_vm0, %v85_v51 }
  0xf3   :  { %v150_v52 = vpop.trf.xlu1  ;;  %v86_v53 = vpop.trf.xlu0 }
  0xf4   :  { %215 = vst.msk [vmem:[%s540_s1 + $0x1c0] sm:$0xff] %vm158_vm0, %v150_v52  ;;  %183 = vst.msk [vmem:[%s540_s1 + $0xc0] sm:$0xff] %vm158_vm0, %v86_v53 }
  0xf7   :  { %v151_v54 = vpop.trf.xlu1  ;;  %v87_v55 = vpop.trf.xlu0 }
  0xf8   :  { %216 = vst.msk [vmem:[%s540_s1 + $0x1c8] sm:$0xff] %vm158_vm0, %v151_v54  ;;  %184 = vst.msk [vmem:[%s540_s1 + $0xc8] sm:$0xff] %vm158_vm0, %v87_v55 }
  0xfb   :  { %v152_v56 = vpop.trf.xlu1  ;;  %v88_v57 = vpop.trf.xlu0 }
  0xfc   :  { %217 = vst.msk [vmem:[%s540_s1 + $0x1d0] sm:$0xff] %vm158_vm0, %v152_v56  ;;  %185 = vst.msk [vmem:[%s540_s1 + $0xd0] sm:$0xff] %vm158_vm0, %v88_v57 }
  0xff   :  { %v153_v58 = vpop.trf.xlu1  ;;  %v89_v59 = vpop.trf.xlu0 }
 0x100   :  { %218 = vst.msk [vmem:[%s540_s1 + $0x1d8] sm:$0xff] %vm158_vm0, %v153_v58  ;;  %186 = vst.msk [vmem:[%s540_s1 + $0xd8] sm:$0xff] %vm158_vm0, %v89_v59 }
 0x103   :  { %v154_v60 = vpop.trf.xlu1  ;;  %v90_v61 = vpop.trf.xlu0 }
 0x104   :  { %219 = vst.msk [vmem:[%s540_s1 + $0x1e0] sm:$0xff] %vm158_vm0, %v154_v60  ;;  %187 = vst.msk [vmem:[%s540_s1 + $0xe0] sm:$0xff] %vm158_vm0, %v90_v61 }
 0x107   :  { %v155_v62 = vpop.trf.xlu1  ;;  %v91_v63 = vpop.trf.xlu0 }
 0x108   :  { %220 = vst.msk [vmem:[%s540_s1 + $0x1e8] sm:$0xff] %vm158_vm0, %v155_v62  ;;  %188 = vst.msk [vmem:[%s540_s1 + $0xe8] sm:$0xff] %vm158_vm0, %v91_v63 }
 0x10b   :  { %v156_v0 = vpop.trf.xlu1  ;;  %v92_v1 = vpop.trf.xlu0 }
 0x10c   :  { %221 = vst.msk [vmem:[%s540_s1 + $0x1f0] sm:$0xff] %vm158_vm0, %v156_v0  ;;  %189 = vst.msk [vmem:[%s540_s1 + $0xf0] sm:$0xff] %vm158_vm0, %v92_v1 }
 0x10f   :  { %v157_v2 = vpop.trf.xlu1  ;;  %v93_v3 = vpop.trf.xlu0 }
 0x110   :  { %222 = vst.msk [vmem:[%s540_s1 + $0x1f8] sm:$0xff] %vm158_vm0, %v157_v2  ;;  %190 = vst.msk [vmem:[%s540_s1 + $0xf8] sm:$0xff] %vm158_vm0, %v93_v3 }
 0x111   :  { %227 = vsyncpa [#allocation3], 1 }

</bundles_post_ra>
